<compile_context>
chip_gen: v7x
topology: tpu7x:2x2x1
jax: 0.10.0
libtpu: 0.0.40
codegen_flags: <defaults>
</compile_context>

<pallas_src>
import jax
import jax.numpy as jnp
import numpy as np
from jax.experimental import pallas as pl
from jax.experimental.pallas import tpu as pltpu

_LANES = 128


def _round_up(x, m):
    return (x + m - 1) // m * m


def _pick_tile(total, cap, multiple=8):
    """Largest divisor of `total` that is <= cap and a multiple of `multiple`;
    falls back to a single full block if none exists."""
    best = None
    t = multiple
    cap = min(cap, total)
    while t <= cap:
        if total % t == 0:
            best = t
        t += multiple
    return best if best is not None else total


def _conv_stats_kernel(p_ref, w_ref, z_ref, st_ref):
    """p_ref (TR,K) bf16, w_ref (K,Cp) bf16 -> z_ref (TR,Cp) f32, st_ref (1,2,Cp) f32."""
    z = jnp.dot(p_ref[...], w_ref[...], preferred_element_type=jnp.float32)
    z_ref[...] = z
    inv_n = 1.0 / z.shape[0]
    mean = jnp.sum(z, axis=0, keepdims=True) * inv_n          # (1, Cp) tile mean
    d = z - mean
    m2 = jnp.sum(d * d, axis=0, keepdims=True)                # (1, Cp) tile M2 (centered)
    st_ref[...] = jnp.concatenate([mean, m2], axis=0).reshape(1, 2, z.shape[1])


def _bn_relu_pool_kernel(sc_ref, sh_ref, z_ref, o_ref):
    """sc/sh (1,Cp) f32, z_ref (Q,TG,Cp) f32 -> o_ref (TG,Cp) f32."""
    y = jnp.maximum(z_ref[...] * sc_ref[...] + sh_ref[...], 0.0)   # BN affine + ReLU
    o_ref[...] = jnp.max(y, axis=0)                                # max over pool offsets


def encoder_block_forward(x_nchw, w_oihw, bias, gamma, beta, *, downsample=True, eps=1e-5,
                          row_tile=256, pool_tile=256):
    # Conv bias cancels exactly under train-mode BatchNorm (mean absorbs it, variance is
    # shift-invariant), so it is not applied in the kernel.
    del bias
    N, Cin, H, W = x_nchw.shape
    Cout = w_oihw.shape[0]
    Cp = _round_up(Cout, _LANES)                       # lane-dense channel dim

    # --- im2col gather in bf16 (JAX glue, no compute) -----------------------------------
    x = jnp.transpose(x_nchw.astype(jnp.bfloat16), (0, 2, 3, 1))   # NHWC bf16
    xp = jnp.pad(x, ((0, 0), (1, 1), (1, 1), (0, 0)))              # conv padding=1

    if downsample:
        assert H % 2 == 0 and W % 2 == 0
        Ho, Wo = H // 2, W // 2
        offsets = ((0, 0), (0, 1), (1, 0), (1, 1))
        stride = 2
    else:
        Ho, Wo = H, W
        offsets = ((0, 0),)
        stride = 1

    Q = len(offsets)
    R_pool = N * Ho * Wo            # pooled output rows, ordered (n, ho, wo)
    R_full = Q * R_pool             # all conv-output rows, ordered (q, n, ho, wo)
    K = 9 * Cin                     # conv taps, ordered (ky, kx, cin)

    patch_list = []
    for dy, dx in offsets:
        cols = []
        for ky in range(3):
            for kx in range(3):
                a, b = dy + ky, dx + kx
                sl = jax.lax.slice(
                    xp,
                    (0, a, b, 0),
                    (N, a + stride * (Ho - 1) + 1, b + stride * (Wo - 1) + 1, Cin),
                    (1, stride, stride, 1),
                )                                                  # (N, Ho, Wo, Cin)
                cols.append(sl)
        patch_list.append(jnp.concatenate(cols, axis=-1).reshape(R_pool, K))
    patches = jnp.concatenate(patch_list, axis=0)                  # (R_full, K) bf16

    # (Cout,Cin,3,3) -> (ky,kx,cin,cout) -> (K, Cp) with zero-padded output lanes
    wmat = jnp.transpose(w_oihw, (2, 3, 1, 0)).reshape(K, Cout)
    wmat = jnp.pad(wmat, ((0, 0), (0, Cp - Cout))).astype(jnp.bfloat16)

    # --- pass 1: conv matmul + per-tile BN partial stats --------------------------------
    TRc = _pick_tile(R_full, row_tile)
    n_tiles = R_full // TRc
    z_flat, tile_stats = pl.pallas_call(
        _conv_stats_kernel,
        grid=(n_tiles,),
        in_specs=[
            pl.BlockSpec((TRc, K), lambda i: (i, 0)),
            pl.BlockSpec((K, Cp), lambda i: (0, 0)),
        ],
        out_specs=(
            pl.BlockSpec((TRc, Cp), lambda i: (i, 0)),
            pl.BlockSpec((1, 2, Cp), lambda i: (i, 0, 0)),
        ),
        out_shape=(
            jax.ShapeDtypeStruct((R_full, Cp), jnp.float32),
            jax.ShapeDtypeStruct((n_tiles, 2, Cp), jnp.float32),
        ),
        compiler_params=pltpu.CompilerParams(
            dimension_semantics=("parallel",),
            vmem_limit_bytes=48 * 1024 * 1024,
        ),
    )(patches, wmat)

    # --- merge per-tile (mean, M2): equal-count Chan/Welford merge (numerically stable) --
    tile_mean = tile_stats[:, 0, :]                               # (n_tiles, Cp)
    tile_m2 = tile_stats[:, 1, :]                                 # (n_tiles, Cp)
    mean = jnp.mean(tile_mean, axis=0)                            # (Cp,)
    m2 = jnp.sum(tile_m2, axis=0) + TRc * jnp.sum((tile_mean - mean) ** 2, axis=0)
    var = m2 / R_full                                             # biased, matches BN training
    gamma_p = jnp.pad(gamma.astype(jnp.float32), (0, Cp - Cout))
    beta_p = jnp.pad(beta.astype(jnp.float32), (0, Cp - Cout))
    inv = jax.lax.rsqrt(var + eps)
    scale = (gamma_p * inv).reshape(1, Cp)
    shift = (beta_p - mean * gamma_p * inv).reshape(1, Cp)

    # --- pass 2: BN apply + ReLU + max over the Q pool offsets ---------------------------
    TGp = _pick_tile(R_pool, pool_tile)
    z3d = z_flat.reshape(Q, R_pool, Cp)
    out_flat = pl.pallas_call(
        _bn_relu_pool_kernel,
        grid=(R_pool // TGp,),
        in_specs=[
            pl.BlockSpec((1, Cp), lambda i: (0, 0)),
            pl.BlockSpec((1, Cp), lambda i: (0, 0)),
            pl.BlockSpec((Q, TGp, Cp), lambda i: (0, i, 0)),
        ],
        out_specs=pl.BlockSpec((TGp, Cp), lambda i: (i, 0)),
        out_shape=jax.ShapeDtypeStruct((R_pool, Cp), jnp.float32),
        compiler_params=pltpu.CompilerParams(
            dimension_semantics=("parallel",),
            vmem_limit_bytes=48 * 1024 * 1024,
        ),
    )(scale, shift, z3d)

    out = out_flat[:, :Cout].reshape(N, Ho, Wo, Cout)
    return jnp.transpose(out, (0, 3, 1, 2))                       # back to NCHW


def reference_forward(x, w, b, gamma, beta, *, downsample=True, eps=1e-5):
    """Pure-JAX reference reproducing the PyTorch module (train-mode BatchNorm).

    Conv operands are quantized to bf16 (with f32 accumulation) to match the kernel's
    bf16 MXU path; all other math is f32, exactly like the module."""
    xq = x.astype(jnp.bfloat16).astype(jnp.float32)
    wq = w.astype(jnp.bfloat16).astype(jnp.float32)
    y = jax.lax.conv_general_dilated(
        xq, wq, (1, 1), ((1, 1), (1, 1)),
        dimension_numbers=("NCHW", "OIHW", "NCHW"),
        precision=jax.lax.Precision.HIGHEST,
    ) + b[None, :, None, None]
    mean = jnp.mean(y, axis=(0, 2, 3), keepdims=True)
    var = jnp.mean((y - mean) ** 2, axis=(0, 2, 3), keepdims=True)     # biased
    y = (y - mean) * jax.lax.rsqrt(var + eps) * gamma[None, :, None, None] + beta[None, :, None, None]
    y = jnp.maximum(y, 0.0)
    if downsample:
        n, c, h, w_ = y.shape
        y = y.reshape(n, c, h // 2, 2, w_ // 2, 2).max(axis=(3, 5))
    return y


if __name__ == "__main__":
    # Small shapes consistent with the module: batch=2, in_channels=4, out_channels=8, 16x16.
    N, Cin, Cout, H, W = 2, 4, 8, 16, 16

    key = jax.random.PRNGKey(0)
    kx, kw, kb, kg, kbt = jax.random.split(key, 5)
    x = jax.random.normal(kx, (N, Cin, H, W), dtype=jnp.float32)
    w = jax.random.normal(kw, (Cout, Cin, 3, 3), dtype=jnp.float32) * (1.0 / jnp.sqrt(9.0 * Cin))
    bias = 0.1 * jax.random.normal(kb, (Cout,), dtype=jnp.float32)
    gamma = 1.0 + 0.1 * jax.random.normal(kg, (Cout,), dtype=jnp.float32)
    beta = 0.1 * jax.random.normal(kbt, (Cout,), dtype=jnp.float32)

    for ds in (True, False):
        out = jax.block_until_ready(
            encoder_block_forward(x, w, bias, gamma, beta, downsample=ds))
        ref = jax.block_until_ready(
            reference_forward(x, w, bias, gamma, beta, downsample=ds))
        assert out.shape == ref.shape, (out.shape, ref.shape)
        np.testing.assert_allclose(np.asarray(out), np.asarray(ref), rtol=2e-3, atol=2e-3)

    print("KERNEL_OK")
</pallas_src>

<mosaic_0001>
module attributes {stable_mosaic.version = 11 : i64} {
  func.func @_conv_stats_kernel(%arg0: i32, %arg1: memref<256x36xbf16, #tpu.memory_space<vmem>>, %arg2: memref<36x128xbf16, #tpu.memory_space<vmem>>, %arg3: memref<256x128xf32, #tpu.memory_space<vmem>>, %arg4: memref<1x2x128xf32, #tpu.memory_space<vmem>>) attributes {dimension_semantics = [#tpu.dimension_semantics<parallel>], iteration_bounds = array<i64: 2>, scalar_prefetch = 0 : i64, scratch_operands = 0 : i64, tpu.core_type = #tpu.core_type<tc>, window_params = [{transform_indices = @transform_0, window_bounds = array<i64: 256, 36>}, {pipeline_mode = #tpu.pipeline_mode<synchronous>, transform_indices = @transform_1, window_bounds = array<i64: 36, 128>}, {transform_indices = @transform_2, window_bounds = array<i64: 256, 128>}, {transform_indices = @transform_3, window_bounds = array<i64: 1, 2, 128>}]} {
    %c0 = arith.constant 0 : index
    %c0_0 = arith.constant 0 : index
    %0 = vector.load %arg1[%c0, %c0_0] : memref<256x36xbf16, #tpu.memory_space<vmem>>, vector<256x36xbf16>
    %c0_1 = arith.constant 0 : index
    %c0_2 = arith.constant 0 : index
    %1 = vector.load %arg2[%c0_1, %c0_2] : memref<36x128xbf16, #tpu.memory_space<vmem>>, vector<36x128xbf16>
    %cst = arith.constant dense<0.000000e+00> : vector<256x128xf32>
    %2 = tpu.matmul %0, %1, %cst {dimension_numbers = #tpu.dot_dimension_numbers<[1], [0], [0], [1], [0, 0, 1, 1], [], []>} : vector<256x36xbf16>, vector<36x128xbf16>, vector<256x128xf32> -> vector<256x128xf32>
    %c0_3 = arith.constant 0 : index
    %c0_4 = arith.constant 0 : index
    %3 = vector.load %arg3[%c0_3, %c0_4] : memref<256x128xf32, #tpu.memory_space<vmem>>, vector<256x128xf32>
    tpu.vector_store %arg3[%c0_3, %c0_4], %2 {strides = array<i32>} : memref<256x128xf32, #tpu.memory_space<vmem>>, vector<256x128xf32>,
    %cst_5 = arith.constant dense<0.000000e+00> : vector<128xf32>
    %4 = vector.multi_reduction <add>, %2, %cst_5 [0] : vector<256x128xf32> to vector<128xf32>
    %5 = vector.shape_cast %4 : vector<128xf32> to vector<1x128xf32>
    %cst_6 = arith.constant 3.906250e-03 : f32
    %6 = vector.broadcast %cst_6 : f32 to vector<1x128xf32>
    %7 = arith.mulf %5, %6 : vector<1x128xf32>
    %8 = vector.broadcast %7 : vector<1x128xf32> to vector<256x128xf32>
    %9 = arith.subf %2, %8 : vector<256x128xf32>
    %10 = arith.mulf %9, %9 : vector<256x128xf32>
    %cst_7 = arith.constant dense<0.000000e+00> : vector<128xf32>
    %11 = vector.multi_reduction <add>, %10, %cst_7 [0] : vector<256x128xf32> to vector<128xf32>
    %12 = vector.shape_cast %11 : vector<128xf32> to vector<1x128xf32>
    %13 = tpu.concatenate %7, %12 in 0 : vector<1x128xf32>, vector<1x128xf32> -> vector<2x128xf32>
    %14 = vector.shape_cast %13 : vector<2x128xf32> to vector<1x2x128xf32>
    %c0_8 = arith.constant 0 : index
    %c0_9 = arith.constant 0 : index
    %c0_10 = arith.constant 0 : index
    %15 = vector.load %arg4[%c0_8, %c0_9, %c0_10] : memref<1x2x128xf32, #tpu.memory_space<vmem>>, vector<1x2x128xf32>
    tpu.vector_store %arg4[%c0_8, %c0_9, %c0_10], %14 {strides = array<i32>} : memref<1x2x128xf32, #tpu.memory_space<vmem>>, vector<1x2x128xf32>,
    return
  }
  func.func @transform_0(%arg0: i32) -> (i32, i32) {
    %c0_i32 = arith.constant 0 : i32
    %c0_i32_0 = arith.constant 0 : i32
    return %arg0, %c0_i32 : i32, i32
  }
  func.func @transform_1(%arg0: i32) -> (i32, i32) {
    %c0_i32 = arith.constant 0 : i32
    %c0_i32_0 = arith.constant 0 : i32
    %c0_i32_1 = arith.constant 0 : i32
    return %c0_i32, %c0_i32_0 : i32, i32
  }
  func.func @transform_2(%arg0: i32) -> (i32, i32) {
    %c0_i32 = arith.constant 0 : i32
    %c0_i32_0 = arith.constant 0 : i32
    return %arg0, %c0_i32 : i32, i32
  }
  func.func @transform_3(%arg0: i32) -> (i32, i32, i32) {
    %c0_i32 = arith.constant 0 : i32
    %c0_i32_0 = arith.constant 0 : i32
    %c0_i32_1 = arith.constant 0 : i32
    return %arg0, %c0_i32, %c0_i32_0 : i32, i32, i32
  }
}

</mosaic_0001>

<bundles_post_ra>
// kernel: tpu_custom_call.1
= control target key start
LH: loop header
LB: loop body
LE: loop exit
PB: predicated region body
PF: predicated region fallthrough
CT: control target
= control target key end

     0   :  { %9 = vsyncpa [#allocation3], 0  ;;  %s1544_s0 = inlined_call_operand.vmem [shape: bf16[512,36], index: 0, kind: input, shape index: {}]   ;;  %s1545_s1 = inlined_call_operand.vmem [shape: bf16[36,128], index: 1, kind: input, shape index: {}]   ;;  %s1546_s2 = inlined_call_operand.hbm [shape: f32[512,128], index: 2, kind: output, shape index: {0}]   ;;  %s1547_s3 = inlined_call_operand.hbm [shape: f32[2,2,128], index: 3, kind: output, shape index: {1}]  }
   0x1   :  { %11 = vsyncpa [#allocation3 + $0x1], 0 }
   0x2   :  { %12 = vsyncpa [#allocation5], 0 }
   0x3   :  { %14 = vsyncpa [#allocation5 + $0x1], 0  ;;  %s1131_s12 = smov 0   ;;  %s1133_s13 = smov 0  }
   0x4   :  { %s1135_s14 = smov 0   ;;  %s1137_s15 = smov 0  }
   0x5 LB: > { %s1152_s16 = sadd.s32 4294967295, %s1105_s15   ;;  %s830_s17 = sadd.s32 4294967294, %s1105_s15   ;;  %s1105_s15 = sphi %s1137_s15, %s1553_s15   ;;  %s1101_s14 = sphi %s1135_s14, %s1552_s14   ;;  %s1097_s13 = sphi %s1133_s13, %s1551_s13   ;;  %s1093_s12 = sphi %s1131_s12, %s1550_s12  }
   0x6   : > { %s1156_s18 = sadd.s32 1, %s1105_s15   ;;  %s74_s19 = sadd.s32 1, %s1101_s14 }
   0x7   : > { %s71_s20 = ssub.s32 %s1105_s15, %s1156_s18  ;;  %p84_p0 = scmp.ne.s32.totalorder %s1101_s14, %s1097_s13 }
   0x8   : > { %p72_p1 = scmp.eq.s32.totalorder %s71_s20, 0  ;;  %p85_p2 = scmp.eq.s32.totalorder %s1152_s16, 1 }
   0x9   : > { %p90_p3 = scmp.ne.s32.totalorder %s1097_s13, %s1093_s12  ;;  %p91_p4 = scmp.eq.s32.totalorder %s830_s17, 1 }
   0xa   : > { %s1167_s21 = scalar_select %p72_p1, %s1101_s14, %s74_s19  }
   0xb   : > { %p1169_p5 = por %p85_p2, %p84_p0  ;;  %p1173_p6 = por %p91_p4, %p90_p3 }
   0xc   : > { %p833_p7 = scmp.ge.s32.totalorder %s1105_s15, 1  ;;  %p147_p8 = scmp.lt.s32.totalorder %s1105_s15, 3 }
   0xe   : > { %p148_p9 = pnand %p833_p7, %p147_p8 }
   0xf   : > { %v992_v0 = vld [vmem:[%s1545_s1] sm:$0xff] (!%p148_p9)   ;;  %v993_v1 = vld [vmem:[%s1545_s1 + $0x8] sm:$0xff] (!%p148_p9)   ;;  %s1186_s28 = sshll.u32 (!%p148_p9), %s1152_s16, 5  ;;  %v994_v2 = vld [vmem:[%s1545_s1 + $0x10] ss:$0 sps:$4 sm:$0x33] (!%p148_p9)  }
  0x10   : > { %151 = sbr.rel (%p148_p9) target bundleno = 424 (0x1a8), region = 28  ;;  %900 = vmatprep.subr.bf16.mxu0 (!%p148_p9), %v992_v0  ;;  %p177_p10 = scmp.lt.s32.totalorder (!%p148_p9), %s1186_s28, 63  ;;  %938 = vmatprep.subr.bf16.mxu1 (!%p148_p9), %v992_v0  ;;  %vm365_vm0 = vcmask (!%p148_p9), 1041408   ;;  %vm316_vm1 = vcmask (!%p148_p9), 293888  }
  0x11   : > { %901 = vmatpush3.bf16.msra.mxu0 (!%p148_p9), %v992_v0  ;;  %941 = vmatpush3.bf16.msra.mxu1 (!%p148_p9), %v992_v0  ;;  %v367_v3 = vsel (!%p148_p9), %vm365_vm0, %v994_v2, 0  ;;  %s1231_s9 = sand.u32 (!%p148_p9), 1, %s1097_s13   ;;  %s880_s17 = sshll.u32 (!%p148_p9), %s1152_s16, 12 }
  0x12   : > { %902 = vmatprep.subr.bf16.mxu0 (!%p148_p9), %v993_v1  ;;  %939 = vmatprep.subr.bf16.mxu1 (!%p148_p9), %v993_v1  ;;  %s834_s10 = sshll.u32 (!%p148_p9), %s1231_s9, 8  ;;  %s1385_s24 = scalar_lea.hbm (!%p148_p9), %s1546_s2, %s880_s17 }
  0x13   : > { %s1236_s11 = scalar_lea.vmem (!%p148_p9), [#allocation2], %s834_s10  ;;  %s705_s26 = scalar_lea.sflag (!%p148_p9), [#allocation3], %s1231_s9 }
  0x14   : > { %s723_s25 = sshll.u32 (!%p148_p9), %s1236_s11, 4  ;;  %s1107_s16 = smov (!%p148_p9), [#allocation2]   ;;  %s1389_s25 = int_to_ptr.vmem [resolvable:$true] %s723_s25 }
  0x15   : > { %903 = vmatpush3.bf16.msra.mxu0 (!%p148_p9), %v993_v1  ;;  %942 = vmatpush3.bf16.msra.mxu1 (!%p148_p9), %v993_v1  ;;  %s1011_s27 = scalar_lea.vmem (!%p148_p9), %s1389_s25, 4096  ;;  %s1015_s29 = sshll.u32 (!%p148_p9), %s1107_s16, 4  ;;  %s1016_s29 = int_to_ptr.vmem [resolvable:$false] %s1015_s29 }
  0x16   : > { %944 = vmatprep.subr.msk.bf16.mxu0 (!%p148_p9), %vm365_vm0, %v994_v2  ;;  %945 = vmatprep.subr.msk.bf16.mxu1 (!%p148_p9), %vm365_vm0, %v994_v2  ;;  %p1012_p11 = scmp.ne.s32.totalorder (!%p148_p9), %s1389_s25, %s1011_s27  ;;  %s1017_s30 = scalar_lea.vmem (!%p148_p9), %s1016_s29, 8192 }
  0x17   : > { %s178_s4 = scalar_select %p177_p10, %s1186_s28, 63 }
  0x18   : > { %p1013_p12 = pnand %p1012_p11, %p1169_p5  ;;  %p1018_p0 = scmp.lt.s32.totalorder %s1389_s25, %s1016_s29 }
  0x19   : > { %s837_s5 = sshll.u32 %s178_s4, 2  ;;  %905 = vmatpush3.bf16.msra.mxu0 %v367_v3  ;;  %943 = vmatpush3.bf16.msra.mxu1 %v367_v3  ;;  %p1019_p1 = scmp.lt.s32.totalorder %s1017_s30, %s1011_s27 }
  0x1a   : > { %s1196_s8 = scalar_lea.vmem %s1544_s0, %s837_s5  ;;  %p1014_p13 = pneg %p1013_p12 }
  0x1b   : > { %v995_v4 = vld [vmem:[%s1196_s8] sm:$0xff]   ;;  %v996_v5 = vld [vmem:[%s1196_s8 + $0x8] sm:$0xff]   ;;  %v997_v6 = vld [vmem:[%s1196_s8 + $0x10] sm:$0xff]   ;;  %p1020_p2 = por %p1019_p1, %p1018_p0 }
  0x1c   : > { %906 = vmatprep.mubr.msk.bf16.mxu0 %vm316_vm1, %v995_v4  ;;  %v998_v7 = vld [vmem:[%s1196_s8 + $0x18] sm:$0xff]   ;;  %v1003_v8 = vld [vmem:[%s1196_s8 + $0x40] sm:$0xff]   ;;  %v1004_v9 = vld [vmem:[%s1196_s8 + $0x48] sm:$0xff]  }
  0x1d   : > { %907 = vmatmul.mubr.msk.bf16.vlgmr.msra.gmra.mrb[0].mxu0 %vm316_vm1, %v996_v5  ;;  %922 = vmatprep.mubr.msk.bf16.mxu1 %vm316_vm1, %v1003_v8  ;;  %v1005_v10 = vld [vmem:[%s1196_s8 + $0x50] sm:$0xff]   ;;  %v999_v11 = vld [vmem:[%s1196_s8 + $0x20] sm:$0xff]   ;;  %v1006_v12 = vld [vmem:[%s1196_s8 + $0x58] sm:$0xff]   ;;  %p1021_p3 = pnand %p1020_p2, %p1014_p13 }
  0x1e   : > { %910 = vmatprep.mubr.msk.bf16.mxu0 %vm316_vm1, %v997_v6  ;;  %923 = vmatmul.mubr.msk.bf16.vlgmr.msra.gmra.mrb[0].mxu1 %vm316_vm1, %v1004_v9  ;;  %v1007_v13 = vld [vmem:[%s1196_s8 + $0x60] sm:$0xff]   ;;  %v1000_v14 = vld [vmem:[%s1196_s8 + $0x28] sm:$0xff]   ;;  %v1001_v15 = vld [vmem:[%s1196_s8 + $0x30] sm:$0xff]  }
  0x1f   : > { %926 = vmatprep.mubr.msk.bf16.mxu1 %vm316_vm1, %v1005_v10  ;;  %v1008_v16 = vld [vmem:[%s1196_s8 + $0x68] sm:$0xff]   ;;  %v1009_v17 = vld [vmem:[%s1196_s8 + $0x70] sm:$0xff]   ;;  %v1002_v18 = vld [vmem:[%s1196_s8 + $0x38] sm:$0xff]  }
  0x20   : > { %v1010_v19 = vld [vmem:[%s1196_s8 + $0x78] sm:$0xff]  }
  0x25   : > { %911 = vmatmul.mubr.msk.bf16.gmra.mrb[4].mxu0 %vm316_vm1, %v998_v7 }
  0x26   : > { %914 = vmatprep.mubr.msk.bf16.mxu0 %vm316_vm1, %v999_v11  ;;  %927 = vmatmul.mubr.msk.bf16.gmra.mrb[4].mxu1 %vm316_vm1, %v1006_v12 }
  0x27   : > { %930 = vmatprep.mubr.msk.bf16.mxu1 %vm316_vm1, %v1007_v13 }
  0x2d   : > { %915 = vmatmul.mubr.msk.bf16.gmra.mrb[8].mxu0 %vm316_vm1, %v1000_v14 }
  0x2e   : > { %918 = vmatprep.mubr.msk.bf16.mxu0 %vm316_vm1, %v1001_v15  ;;  %931 = vmatmul.mubr.msk.bf16.gmra.mrb[8].mxu1 %vm316_vm1, %v1008_v16 }
  0x2f   : > { %934 = vmatprep.mubr.msk.bf16.mxu1 %vm316_vm1, %v1009_v17 }
  0x35   : > { %919 = vmatmul.mubr.msk.bf16.gmra.mrb[12].mxu0 %vm316_vm1, %v1002_v18 }
  0x36   : > { %935 = vmatmul.mubr.msk.bf16.gmra.mrb[12].mxu1 %vm316_vm1, %v1010_v19 }
  0xf0   : > { %v1234_v20 = vpop.f32.mrb[0].mxu0 }
  0xf1   : > { %532 = vst [vmem:[%s1236_s11 + $0x10] sm:$0xff] %v1234_v20  ;;  %v1240_v21 = vpop.f32.mrb[1].mxu0  ;;  %v1254_v25 = vpop.f32.mrb[0].mxu1 }
  0xf2   : > { %530 = vst [vmem:[%s1236_s11] sm:$0xff] %v1240_v21  ;;  %v1244_v22 = vpop.f32.mrb[2].mxu0  ;;  %548 = vst [vmem:[%s1236_s11 + $0x90] sm:$0xff] %v1254_v25  ;;  %v1259_v27 = vpop.f32.mrb[1].mxu1 }
  0xf3   : > { %533 = vst [vmem:[%s1236_s11 + $0x18] sm:$0xff] %v1244_v22  ;;  %v1248_v23 = vpop.f32.mrb[3].mxu0  ;;  %546 = vst [vmem:[%s1236_s11 + $0x80] sm:$0xff] %v1259_v27  ;;  %v1263_v28 = vpop.f32.mrb[2].mxu1 }
  0xf4   : > { %531 = vst [vmem:[%s1236_s11 + $0x8] sm:$0xff] %v1248_v23  ;;  %v562_v24 = vadd.f32 %v1248_v23, %v1240_v21  ;;  %549 = vst [vmem:[%s1236_s11 + $0x98] sm:$0xff] %v1263_v28  ;;  %v1270_v31 = vpop.f32.mrb[3].mxu1 }
  0xf5   : > { %547 = vst [vmem:[%s1236_s11 + $0x88] sm:$0xff] %v1270_v31 }
  0xf6   : > { %v563_v26 = vadd.f32 %v1234_v20, %v562_v24 }
  0xf8   : > { %v1265_v29 = vpop.f32.mrb[4].mxu0  ;;  %v564_v30 = vadd.f32 %v1244_v22, %v563_v26 }
  0xf9   : > { %536 = vst [vmem:[%s1236_s11 + $0x30] sm:$0xff] %v1265_v29  ;;  %v1274_v32 = vpop.f32.mrb[5].mxu0  ;;  %v1290_v37 = vpop.f32.mrb[4].mxu1 }
  0xfa   : > { %534 = vst [vmem:[%s1236_s11 + $0x20] sm:$0xff] %v1274_v32  ;;  %v565_v33 = vadd.f32 %v564_v30, %v1274_v32  ;;  %v1281_v34 = vpop.f32.mrb[6].mxu0  ;;  %552 = vst [vmem:[%s1236_s11 + $0xb0] sm:$0xff] %v1290_v37  ;;  %v1295_v39 = vpop.f32.mrb[5].mxu1 }
  0xfb   : > { %537 = vst [vmem:[%s1236_s11 + $0x38] sm:$0xff] %v1281_v34  ;;  %v1285_v35 = vpop.f32.mrb[7].mxu0  ;;  %550 = vst [vmem:[%s1236_s11 + $0xa0] sm:$0xff] %v1295_v39  ;;  %v1299_v40 = vpop.f32.mrb[6].mxu1 }
  0xfc   : > { %535 = vst [vmem:[%s1236_s11 + $0x28] sm:$0xff] %v1285_v35  ;;  %v566_v36 = vadd.f32 %v565_v33, %v1285_v35  ;;  %553 = vst [vmem:[%s1236_s11 + $0xb8] sm:$0xff] %v1299_v40  ;;  %v1306_v43 = vpop.f32.mrb[7].mxu1 }
  0xfd   : > { %551 = vst [vmem:[%s1236_s11 + $0xa8] sm:$0xff] %v1306_v43 }
  0xfe   : > { %v567_v38 = vadd.f32 %v1265_v29, %v566_v36 }
 0x100   : > { %v1301_v41 = vpop.f32.mrb[8].mxu0  ;;  %v568_v42 = vadd.f32 %v1281_v34, %v567_v38 }
 0x101   : > { %540 = vst [vmem:[%s1236_s11 + $0x50] sm:$0xff] %v1301_v41  ;;  %v1310_v44 = vpop.f32.mrb[9].mxu0  ;;  %v1326_v49 = vpop.f32.mrb[8].mxu1 }
 0x102   : > { %538 = vst [vmem:[%s1236_s11 + $0x40] sm:$0xff] %v1310_v44  ;;  %v569_v45 = vadd.f32 %v568_v42, %v1310_v44  ;;  %v1317_v46 = vpop.f32.mrb[10].mxu0  ;;  %556 = vst [vmem:[%s1236_s11 + $0xd0] sm:$0xff] %v1326_v49  ;;  %v1331_v51 = vpop.f32.mrb[9].mxu1 }
 0x103   : > { %541 = vst [vmem:[%s1236_s11 + $0x58] sm:$0xff] %v1317_v46  ;;  %v1321_v47 = vpop.f32.mrb[11].mxu0  ;;  %554 = vst [vmem:[%s1236_s11 + $0xc0] sm:$0xff] %v1331_v51  ;;  %v1335_v52 = vpop.f32.mrb[10].mxu1 }
 0x104   : > { %539 = vst [vmem:[%s1236_s11 + $0x48] sm:$0xff] %v1321_v47  ;;  %v570_v48 = vadd.f32 %v569_v45, %v1321_v47  ;;  %557 = vst [vmem:[%s1236_s11 + $0xd8] sm:$0xff] %v1335_v52  ;;  %v1342_v55 = vpop.f32.mrb[11].mxu1 }
 0x105   : > { %555 = vst [vmem:[%s1236_s11 + $0xc8] sm:$0xff] %v1342_v55 }
 0x106   : > { %v571_v50 = vadd.f32 %v1301_v41, %v570_v48 }
 0x108   : > { %v1337_v53 = vpop.f32.mrb[12].mxu0  ;;  %v572_v54 = vadd.f32 %v1317_v46, %v571_v50 }
 0x109   : > { %544 = vst [vmem:[%s1236_s11 + $0x70] sm:$0xff] %v1337_v53  ;;  %v1346_v56 = vpop.f32.mrb[13].mxu0  ;;  %v1362_v61 = vpop.f32.mrb[12].mxu1 }
 0x10a   : > { %542 = vst [vmem:[%s1236_s11 + $0x60] sm:$0xff] %v1346_v56  ;;  %v573_v57 = vadd.f32 %v572_v54, %v1346_v56  ;;  %v1353_v58 = vpop.f32.mrb[14].mxu0  ;;  %560 = vst [vmem:[%s1236_s11 + $0xf0] sm:$0xff] %v1362_v61  ;;  %v1367_v63 = vpop.f32.mrb[13].mxu1 }
 0x10b   : > { %545 = vst [vmem:[%s1236_s11 + $0x78] sm:$0xff] %v1353_v58  ;;  %v1357_v59 = vpop.f32.mrb[15].mxu0  ;;  %558 = vst [vmem:[%s1236_s11 + $0xe0] sm:$0xff] %v1367_v63  ;;  %v1371_v0 = vpop.f32.mrb[14].mxu1 }
 0x10c   : > { %543 = vst [vmem:[%s1236_s11 + $0x68] sm:$0xff] %v1357_v59  ;;  %v574_v60 = vadd.f32 %v573_v57, %v1357_v59  ;;  %561 = vst [vmem:[%s1236_s11 + $0xf8] sm:$0xff] %v1371_v0  ;;  %v1376_v2 = vpop.f32.mrb[15].mxu1 }
 0x10d   : > { %559 = vst [vmem:[%s1236_s11 + $0xe8] sm:$0xff] %v1376_v2 }
 0x10e   : > { %v575_v62 = vadd.f32 %v1337_v53, %v574_v60 }
 0x110   : > { %v576_v1 = vadd.f32 %v1353_v58, %v575_v62 }
 0x112   : > { %v577_v3 = vadd.f32 %v576_v1, %v1259_v27 }
 0x114   : > { %v578_v4 = vadd.f32 %v577_v3, %v1270_v31 }
 0x116   : > { %v579_v5 = vadd.f32 %v1254_v25, %v578_v4 }
 0x117   : > { %1024 = shalt.err (!%p1021_p3)
}
 0x118   : > { %s1025_s4 = scalar_lea.hbm %s1385_s24, 4096  ;;  %s1029_s7 = scalar_lea.hbm %s1546_s2, 8192 }
 0x119   : > { %p1026_p4 = scmp.ne.s32.totalorder %s1385_s24, %s1025_s4  ;;  %p1030_p9 = scmp.lt.u32.totalorder %s1385_s24, %s1546_s2 }
 0x11a   : > { %p1031_p10 = scmp.lt.u32.totalorder %s1029_s7, %s1025_s4  ;;  %p1033_p12 = scmp.lt.u32.totalorder %s1025_s4, %s1385_s24 }
 0x11b   : > { %p1027_p7 = pnand %p1026_p4, %p1169_p5 }
 0x11c   : > { %p1032_p11 = por %p1031_p10, %p1030_p9 }
 0x11d   : > { %p1028_p8 = pneg %p1027_p7 }
 0x11e   : > { %p1034_p13 = por %p1033_p12, %p1032_p11 }
 0x120   : > { %p1035_p0 = pnand %p1034_p13, %p1028_p8 }
 0x122   : > { %1038 = shalt.err (!%p1035_p0)
}
 0x123   : > { %s1108_s11 = smov 128   ;;  %s1109_s17 = smov 8   ;;  %v580_v6 = vadd.f32 %v1263_v28, %v579_v5  ;;  %vm701_vm2 = vcmask 1040384  }
 0x124   : > { %946 = dma.vmem_to_hbm [thread:$0]  (%p1169_p5), %s1389_s25, 4096, %s1385_s24, %s705_s26, %s1108_s11, %s1108_s11, %s1109_s17  }
 0x125   : > { %v581_v7 = vadd.f32 %v580_v6, %v1295_v39  ;;  %s835_s19 = sshll.u32 %s1231_s9, 1  ;;  %s1500_s27 = scalar_lea.hbm %s1547_s3, %s1186_s28 }
 0x126   : > { %s175_s20 = scalar_lea.vmem [#allocation4], %s835_s19  ;;  %s710_s16 = scalar_lea.sflag [#allocation5], %s1231_s9 }
 0x127   : > { %v582_v8 = vadd.f32 %v581_v7, %v1306_v43  ;;  %s739_s24 = sshll.u32 %s175_s20, 4  ;;  %s1110_s30 = smov [#allocation4]   ;;  %s1502_s24 = int_to_ptr.vmem [resolvable:$true] %s739_s24 }
 0x128   : > { %s1039_s29 = scalar_lea.vmem %s1502_s24, 32  ;;  %s1043_s4 = sshll.u32 %s1110_s30, 4  ;;  %s1044_s4 = int_to_ptr.vmem [resolvable:$false] %s1043_s4 }
 0x129   : > { %v583_v9 = vadd.f32 %v1290_v37, %v582_v8  ;;  %p1040_p1 = scmp.ne.s32.totalorder %s1502_s24, %s1039_s29  ;;  %s1045_s5 = scalar_lea.vmem %s1044_s4, 64 }
 0x12a   : > { %p1046_p4 = scmp.lt.s32.totalorder %s1502_s24, %s1044_s4  ;;  %p1047_p7 = scmp.lt.s32.totalorder %s1045_s5, %s1039_s29 }
 0x12b   : > { %v584_v10 = vadd.f32 %v1299_v40, %v583_v9  ;;  %p1041_p2 = pnand %p1040_p1, %p1169_p5 }
 0x12c   : > { %p1048_p8 = por %p1047_p7, %p1046_p4 }
 0x12d   : > { %v585_v11 = vadd.f32 %v584_v10, %v1331_v51  ;;  %p1042_p3 = pneg %p1041_p2 }
 0x12f   : > { %v586_v12 = vadd.f32 %v585_v11, %v1342_v55  ;;  %p1049_p9 = pnand %p1048_p8, %p1042_p3 }
 0x131   : > { %v587_v13 = vadd.f32 %v1326_v49, %v586_v12 }
 0x133   : > { %v588_v14 = vadd.f32 %v1335_v52, %v587_v13 }
 0x135   : > { %v589_v15 = vadd.f32 %v588_v14, %v1367_v63 }
 0x137   : > { %v590_v16 = vadd.f32 %v589_v15, %v1376_v2 }
 0x139   : > { %v591_v17 = vadd.f32 %v1362_v61, %v590_v16 }
 0x13b   : > { %v592_v18 = vadd.f32 %v1371_v0, %v591_v17 }
 0x13d   : > { %v593_v19 = vrot.slane %v592_v18, 4 }
 0x13f   : > { %v594_v24 = vadd.f32 %v593_v19, %v592_v18 }
 0x141   : > { %v595_v26 = vrot.slane %v594_v24, 2 }
 0x143   : > { %v596_v30 = vadd.f32 %v595_v26, %v594_v24 }
 0x145   : > { %v597_v33 = vrot.slane %v596_v30, 1 }
 0x147   : > { %v598_v36 = vadd.f32 %v597_v33, %v596_v30 }
 0x149   : > { %v1429_v38 = vmul.f32 0.00390625, %v598_v36 }
 0x14b   : > { %v600_v42 = vsub.f32 %v1240_v21, %v1429_v38  ;;  %v601_v45 = vsub.f32 %v1248_v23, %v1429_v38  ;;  %v602_v48 = vsub.f32 %v1234_v20, %v1429_v38  ;;  %v603_v57 = vsub.f32 %v1244_v22, %v1429_v38 }
 0x14c   : > { %v604_v60 = vsub.f32 %v1274_v32, %v1429_v38  ;;  %v605_v3 = vsub.f32 %v1285_v35, %v1429_v38  ;;  %v606_v23 = vsub.f32 %v1265_v29, %v1429_v38  ;;  %v607_v6 = vsub.f32 %v1281_v34, %v1429_v38 }
 0x14d   : > { %v632_v50 = vmul.f32 %v600_v42, %v600_v42  ;;  %v633_v54 = vmul.f32 %v601_v45, %v601_v45  ;;  %v634_v62 = vmul.f32 %v602_v48, %v602_v48  ;;  %v635_v21 = vmul.f32 %v603_v57, %v603_v57 }
 0x14e   : > { %v636_v5 = vmul.f32 %v604_v60, %v604_v60  ;;  %v637_v7 = vmul.f32 %v605_v3, %v605_v3  ;;  %v608_v32 = vsub.f32 %v1310_v44, %v1429_v38  ;;  %v638_v8 = vmul.f32 %v606_v23, %v606_v23 }
 0x14f   : > { %v664_v1 = vadd.f32 %v633_v54, %v632_v50  ;;  %v609_v35 = vsub.f32 %v1321_v47, %v1429_v38  ;;  %v639_v10 = vmul.f32 %v607_v6, %v607_v6  ;;  %v610_v29 = vsub.f32 %v1301_v41, %v1429_v38 }
 0x150   : > { %v640_v12 = vmul.f32 %v608_v32, %v608_v32  ;;  %v611_v34 = vsub.f32 %v1317_v46, %v1429_v38  ;;  %v612_v44 = vsub.f32 %v1346_v56, %v1429_v38  ;;  %v613_v47 = vsub.f32 %v1357_v59, %v1429_v38 }
 0x151   : > { %v665_v4 = vadd.f32 %v664_v1, %v634_v62  ;;  %v641_v14 = vmul.f32 %v609_v35, %v609_v35  ;;  %v642_v16 = vmul.f32 %v610_v29, %v610_v29  ;;  %v614_v41 = vsub.f32 %v1337_v53, %v1429_v38 }
 0x152   : > { %v643_v18 = vmul.f32 %v611_v34, %v611_v34  ;;  %v644_v24 = vmul.f32 %v612_v44, %v612_v44  ;;  %v615_v46 = vsub.f32 %v1353_v58, %v1429_v38  ;;  %v645_v30 = vmul.f32 %v613_v47, %v613_v47 }
 0x153   : > { %v666_v20 = vadd.f32 %v665_v4, %v635_v21  ;;  %v616_v56 = vsub.f32 %v1259_v27, %v1429_v38  ;;  %v646_v36 = vmul.f32 %v614_v41, %v614_v41  ;;  %v617_v59 = vsub.f32 %v1270_v31, %v1429_v38 }
 0x154   : > { %v647_v45 = vmul.f32 %v615_v46, %v615_v46  ;;  %v618_v53 = vsub.f32 %v1254_v25, %v1429_v38  ;;  %v619_v58 = vsub.f32 %v1263_v28, %v1429_v38  ;;  %v620_v27 = vsub.f32 %v1295_v39, %v1429_v38 }
 0x155   : > { %v667_v22 = vadd.f32 %v666_v20, %v636_v5  ;;  %v648_v50 = vmul.f32 %v616_v56, %v616_v56  ;;  %v649_v57 = vmul.f32 %v617_v59, %v617_v59  ;;  %v621_v31 = vsub.f32 %v1306_v43, %v1429_v38 }
 0x156   : > { %v650_v62 = vmul.f32 %v618_v53, %v618_v53  ;;  %v651_v3 = vmul.f32 %v619_v58, %v619_v58  ;;  %v622_v25 = vsub.f32 %v1290_v37, %v1429_v38  ;;  %v652_v4 = vmul.f32 %v620_v27, %v620_v27 }
 0x157   : > { %v668_v9 = vadd.f32 %v667_v22, %v637_v7  ;;  %v623_v28 = vsub.f32 %v1299_v40, %v1429_v38  ;;  %v653_v5 = vmul.f32 %v621_v31, %v621_v31  ;;  %v624_v39 = vsub.f32 %v1331_v51, %v1429_v38 }
 0x158   : > { %v654_v6 = vmul.f32 %v622_v25, %v622_v25  ;;  %v625_v43 = vsub.f32 %v1342_v55, %v1429_v38  ;;  %v626_v37 = vsub.f32 %v1326_v49, %v1429_v38  ;;  %v627_v40 = vsub.f32 %v1335_v52, %v1429_v38 }
 0x159   : > { %v669_v11 = vadd.f32 %v668_v9, %v638_v8  ;;  %v655_v22 = vmul.f32 %v623_v28, %v623_v28  ;;  %v656_v8 = vmul.f32 %v624_v39, %v624_v39  ;;  %v628_v51 = vsub.f32 %v1367_v63, %v1429_v38 }
 0x15a   : > { %v657_v35 = vmul.f32 %v625_v43, %v625_v43  ;;  %v629_v55 = vsub.f32 %v1376_v2, %v1429_v38  ;;  %v630_v49 = vsub.f32 %v1362_v61, %v1429_v38  ;;  %v631_v52 = vsub.f32 %v1371_v0, %v1429_v38 }
 0x15b   : > { %v670_v13 = vadd.f32 %v669_v11, %v639_v10  ;;  %v658_v11 = vmul.f32 %v626_v37, %v626_v37  ;;  %v660_v34 = vmul.f32 %v628_v51, %v628_v51 }
 0x15c   : > { %v662_v63 = vmul.f32 %v630_v49, %v630_v49 }
 0x15d   : > { %v671_v15 = vadd.f32 %v670_v13, %v640_v12  ;;  %v659_v12 = vmul.f32 %v627_v40, %v627_v40 }
 0x15f   : > { %v672_v17 = vadd.f32 %v671_v15, %v641_v14  ;;  %v661_v15 = vmul.f32 %v629_v55, %v629_v55 }
 0x161   : > { %v673_v19 = vadd.f32 %v672_v17, %v642_v16  ;;  %v663_v17 = vmul.f32 %v631_v52, %v631_v52 }
 0x163   : > { %v674_v26 = vadd.f32 %v673_v19, %v643_v18 }
 0x165   : > { %v675_v33 = vadd.f32 %v674_v26, %v644_v24 }
 0x167   : > { %v676_v42 = vadd.f32 %v675_v33, %v645_v30 }
 0x169   : > { %v677_v48 = vadd.f32 %v676_v42, %v646_v36 }
 0x16b   : > { %v678_v54 = vadd.f32 %v677_v48, %v647_v45 }
 0x16d   : > { %v679_v60 = vadd.f32 %v678_v54, %v648_v50 }
 0x16f   : > { %v680_v1 = vadd.f32 %v679_v60, %v649_v57 }
 0x171   : > { %v681_v21 = vadd.f32 %v680_v1, %v650_v62 }
 0x173   : > { %v682_v23 = vadd.f32 %v681_v21, %v651_v3 }
 0x175   : > { %v683_v20 = vadd.f32 %v682_v23, %v652_v4 }
 0x177   : > { %v684_v7 = vadd.f32 %v683_v20, %v653_v5 }
 0x179   : > { %v685_v32 = vadd.f32 %v684_v7, %v654_v6 }
 0x17b   : > { %v686_v9 = vadd.f32 %v685_v32, %v655_v22 }
 0x17d   : > { %v687_v10 = vadd.f32 %v686_v9, %v656_v8 }
 0x17f   : > { %v688_v29 = vadd.f32 %v687_v10, %v657_v35 }
 0x181   : > { %v689_v13 = vadd.f32 %v688_v29, %v658_v11 }
 0x183   : > { %v690_v14 = vadd.f32 %v689_v13, %v659_v12 }
 0x185   : > { %v691_v44 = vadd.f32 %v690_v14, %v660_v34 }
 0x187   : > { %v692_v16 = vadd.f32 %v691_v44, %v661_v15 }
 0x189   : > { %v693_v47 = vadd.f32 %v692_v16, %v662_v63 }
 0x18b   : > { %v694_v2 = vadd.f32 %v693_v47, %v663_v17 }
 0x18d   : > { %v695_v18 = vrot.slane %v694_v2, 4 }
 0x18f   : > { %v696_v19 = vadd.f32 %v695_v18, %v694_v2 }
 0x191   : > { %v697_v41 = vrot.slane %v696_v19, 2 }
 0x193   : > { %v698_v61 = vadd.f32 %v697_v41, %v696_v19 }
 0x195   : > { %v699_v24 = vrot.slane %v698_v61, 1 }
 0x197   : > { %v700_v0 = vadd.f32 %v699_v24, %v698_v61 }
 0x199   : > { %v702_v26 = vsel %vm701_vm2, %v1429_v38, %v700_v0 }
 0x19a   : > { %703 = vst [vmem:[%s175_s20] sm:$0x3] %v702_v26 }
 0x19b   : > { %1052 = shalt.err (!%p1049_p9)
}
 0x19c   : > { %s1053_s28 = scalar_lea.hbm %s1500_s27, 32  ;;  %s1057_s7 = scalar_lea.hbm %s1547_s3, 64 }
 0x19d   : > { %p1054_p10 = scmp.ne.s32.totalorder %s1500_s27, %s1053_s28  ;;  %p1058_p13 = scmp.lt.u32.totalorder %s1500_s27, %s1547_s3 }
 0x19e   : > { %p1059_p0 = scmp.lt.u32.totalorder %s1057_s7, %s1053_s28  ;;  %p1061_p2 = scmp.lt.u32.totalorder %s1053_s28, %s1500_s27 }
 0x19f   : > { %p1055_p11 = pnand %p1054_p10, %p1169_p5 }
 0x1a0   : > { %p1060_p1 = por %p1059_p0, %p1058_p13 }
 0x1a1   : > { %p1056_p12 = pneg %p1055_p11 }
 0x1a2   : > { %p1062_p3 = por %p1061_p2, %p1060_p1 }
 0x1a4   : > { %p1063_p4 = pnand %p1062_p3, %p1056_p12 }
 0x1a6   : > { %1066 = shalt.err (!%p1063_p4)
}
 0x1a7   : > { %947 = dma.vmem_to_hbm [thread:$0]  (%p1169_p5), %s1502_s24, 32, %s1500_s27, %s710_s16  }
 0x1a8 PF: > { %p957_p7 = scmp.ge.s32.totalorder %s1105_s15, 2  ;;  %s751_s11 = sand.u32 1, %s1093_s12  }
 0x1a9   : > { %s752_s17 = scalar_lea.sflag [#allocation3], %s751_s11 }
 0x1aa   : > { %p951_p8 = pnand %p957_p7, %p1173_p6 }
 0x1ac   : > { %1084 = dma.done.wait (!%p951_p8), %s752_s17, 4096  }
 0x1ad   : > { %1086 = vsyncadd (!%p951_p8), %s752_s17, 4294963200  ;;  %s761_s19 = scalar_lea.sflag [#allocation5], %s751_s11 }
 0x1ae   : > { %1088 = dma.done.wait (!%p951_p8), %s761_s19, 32  }
 0x1af   : > { %1090 = vsyncadd (!%p951_p8), %s761_s19, 4294967264  ;;  %p17_p5 = scmp.ge.s32.totalorder %s1156_s18, 4   ;;  %s1550_s12 = smov %s1097_s13 }
 0x1b0   : > { %s1551_s13 = smov %s1101_s14  ;;  %s1552_s14 = smov %s1167_s21 }
 0x1b1   : > { %s1553_s15 = smov %s1156_s18  ;;  %19 = sbr.rel (!%p17_p5) target bundleno = 5 (0x5), region = 80 }
 0x1b8   :  { %766 = vsyncpa [#allocation3], 1 }
 0x1b9   :  { %768 = vsyncpa [#allocation3 + $0x1], 1 }
 0x1ba   :  { %769 = vsyncpa [#allocation5], 1 }
 0x1bb   :  { %771 = vsyncpa [#allocation5 + $0x1], 1 }

</bundles_post_ra>
